<compile_context>
chip_gen: v6e
topology: v6e:2x2x1
jax: 0.10.0
libtpu: 0.0.40
codegen_flags: <defaults>
</compile_context>

<pallas_src>
import functools

import jax
import jax.numpy as jnp
from jax.experimental import pallas as pl
from jax.experimental.pallas import tpu as pltpu


def _make_divisible(v, divisor=8, min_value=None):
    # Same helper as torchvision / mobilenetv3.
    if min_value is None:
        min_value = divisor
    new_v = max(min_value, int(v + divisor / 2) // divisor * divisor)
    if new_v < 0.9 * v:
        new_v += divisor
    return new_v


def _se_kernel(x_ref, w1t_ref, b1_ref, w2t_ref, b2_ref, o_ref, *, inv_hw):
    # x_ref: (nb, C, HW) block, kept in the native input dtype.
    x = x_ref[...]                                               # (nb, C, HW)

    # adaptive_avg_pool2d(., 1): per-channel mean over spatial dims, with f32
    # accumulation only on the small (nb, C) result (no f32 copy of the tile).
    pooled = jnp.sum(x, axis=-1, dtype=jnp.float32) * inv_hw     # (nb, C) f32

    # fc1 (1x1 conv) + ReLU:   (nb, C) @ (C, S) + (1, S); f32 accumulation.
    h = jnp.dot(pooled.astype(w1t_ref.dtype), w1t_ref[...],
                preferred_element_type=jnp.float32) + b1_ref[...]
    h = jnp.maximum(h, 0.0)                                      # (nb, S)

    # fc2 (1x1 conv):          (nb, S) @ (S, C) + (1, C)
    s = jnp.dot(h.astype(w2t_ref.dtype), w2t_ref[...],
                preferred_element_type=jnp.float32) + b2_ref[...]

    # hardsigmoid: clamp((s + 3) / 6, 0, 1) on the tiny (nb, C) array only.
    scale = jnp.clip((s + 3.0) / 6.0, 0.0, 1.0)                  # (nb, C) f32

    # Apply the scale in the input dtype (single cast of the tiny scale; the
    # big elementwise pass stays native-dtype and store/DMA-bound).
    o_ref[...] = (x * scale.astype(x.dtype)[:, :, None]).astype(o_ref.dtype)


def _vmem_budget():
    """Generation-aware budget (bytes) for the pipelined I/O tiles."""
    try:
        info = pltpu.get_tpu_info()
        cap = getattr(info, "vmem_capacity_bytes", 0)
        if cap:
            # Keep I/O tiles to ~1/4 of physical VMEM; cap for half-VMEM parts.
            return int(min(cap // 4, 24 << 20))
    except Exception:
        pass
    # Conservative fallback that fits v5e's 16 MiB default scoped VMEM.
    return 12 << 20


def _pick_batch_block(n, c, hw, itemsize, vmem_budget,
                      target_tile_bytes=2 << 20, min_tile_bytes=256 << 10):
    """Batch elements per grid step.

    Prefer >= min(N, 4) grid steps of <= ~2 MiB each (DMA overlap + both
    TensorCores busy on v7x), subject to the real VMEM footprint (double-
    buffered input + output tiles plus ~1 tile of in-kernel temporaries)
    fitting the generation-aware budget.
    """
    def tile_bytes(b):
        return b * c * hw * itemsize

    def footprint(b):
        # 2x double-buffered input + 2x double-buffered output + ~1 tile of
        # in-kernel temporaries; weights/biases are negligible.
        return 5 * tile_bytes(b)

    divisors = [d for d in range(1, n + 1) if n % d == 0]
    candidates = [d for d in divisors if footprint(d) <= vmem_budget]
    if not candidates:
        # TODO(synk): fall back to gridding over HW chunks (two-pass pool then
        # scale) when even a single batch element does not fit VMEM.
        return 1

    small = [d for d in candidates if tile_bytes(d) <= target_tile_bytes]
    pool = small if small else [min(candidates)]

    tiny_problem = tile_bytes(max(pool)) < min_tile_bytes
    multi = [d for d in pool
             if n // d >= min(n, 4)
             and (tiny_problem or tile_bytes(d) >= min_tile_bytes)]
    return max(multi) if multi else max(pool)


def squeeze_excitation(x_nchw, w1, b1, w2, b2):
    """MobileNetV3 SqueezeExcitation forward.

    x_nchw: [N, C, H, W]; w1: [S, C]; b1: [S]; w2: [C, S]; b2: [C].
    Returns [N, C, H, W] with the same dtype as x_nchw.
    """
    N, C, H, W = x_nchw.shape
    HW = H * W
    S = w1.shape[0]

    # TODO(synk): if the producer's layout makes this reshape a real HBM
    # relayout, accept (nb, C, H, W) blocks and reduce over the last two axes
    # in-kernel instead.
    x = x_nchw.reshape(N, C, HW)
    dt = x.dtype

    # Row-vector (lane-dense) formulation: transposed weights in the
    # activation dtype (f32 accumulation happens on the MXU), f32 biases.
    w1t = jnp.asarray(w1, dt).T                      # (C, S)
    w2t = jnp.asarray(w2, dt).T                      # (S, C)
    b1r = jnp.asarray(b1, jnp.float32).reshape(1, S)
    b2r = jnp.asarray(b2, jnp.float32).reshape(1, C)

    budget = _vmem_budget()
    nb = _pick_batch_block(N, C, HW, dt.itemsize, budget)
    grid_n = N // nb

    footprint = 5 * nb * C * HW * dt.itemsize
    vmem_limit = int(min(max(footprint * 1.2 + (2 << 20), 8 << 20), 32 << 20))

    kernel = functools.partial(_se_kernel, inv_hw=1.0 / HW)

    cost = pl.CostEstimate(
        flops=2 * N * (C * HW + 2 * S * C) + N * C * HW,
        transcendentals=0,
        bytes_accessed=2 * N * C * HW * dt.itemsize
        + 2 * C * S * dt.itemsize + (S + C) * 4,
    )

    out = pl.pallas_call(
        kernel,
        out_shape=jax.ShapeDtypeStruct((N, C, HW), dt),
        grid_spec=pltpu.PrefetchScalarGridSpec(
            num_scalar_prefetch=0,
            grid=(grid_n,),
            in_specs=[
                pl.BlockSpec((nb, C, HW), lambda i: (i, 0, 0)),   # x block
                pl.BlockSpec((C, S), lambda i: (0, 0)),           # fc1 weight^T
                pl.BlockSpec((1, S), lambda i: (0, 0)),           # fc1 bias
                pl.BlockSpec((S, C), lambda i: (0, 0)),           # fc2 weight^T
                pl.BlockSpec((1, C), lambda i: (0, 0)),           # fc2 bias
            ],
            out_specs=pl.BlockSpec((nb, C, HW), lambda i: (i, 0, 0)),
        ),
        compiler_params=pltpu.CompilerParams(
            dimension_semantics=("parallel",),
            vmem_limit_bytes=vmem_limit,
        ),
        cost_estimate=cost,
    )(x, w1t, b1r, w2t, b2r)

    return out.reshape(N, C, H, W)


def reference_se(x, w1, b1, w2, b2):
    """Pure-JAX reference matching the PyTorch forward."""
    xf = x.astype(jnp.float32)
    pooled = jnp.mean(xf, axis=(2, 3))                       # (N, C)
    h = jnp.maximum(pooled @ w1.T + b1, 0.0)                 # (N, S)
    s = h @ w2.T + b2                                        # (N, C)
    scale = jnp.clip((s + 3.0) / 6.0, 0.0, 1.0)
    return (xf * scale[:, :, None, None]).astype(x.dtype)


if __name__ == "__main__":
    # Module config: input_channels=16, squeeze_factor=4
    #   squeeze_channels = _make_divisible(16 // 4, 8) = 8
    input_channels = 16
    squeeze_channels = _make_divisible(input_channels // 4, 8)

    N, C, H, W = 2, input_channels, 16, 16

    key = jax.random.PRNGKey(0)
    kx, k1, k2, k3, k4 = jax.random.split(key, 5)

    x = jax.random.normal(kx, (N, C, H, W), dtype=jnp.float32)
    # fc1: Conv2d(C, S, 1) -> weight (S, C), bias (S,)
    w1 = jax.random.normal(k1, (squeeze_channels, C), dtype=jnp.float32) * 0.1
    b1 = jax.random.normal(k2, (squeeze_channels,), dtype=jnp.float32) * 0.1
    # fc2: Conv2d(S, C, 1) -> weight (C, S), bias (C,)
    w2 = jax.random.normal(k3, (C, squeeze_channels), dtype=jnp.float32) * 0.1
    b2 = jax.random.normal(k4, (C,), dtype=jnp.float32) * 0.1

    out = squeeze_excitation(x, w1, b1, w2, b2)
    out = jax.block_until_ready(out)

    ref = reference_se(x, w1, b1, w2, b2)
    assert out.shape == (N, C, H, W)
    assert jnp.allclose(out, ref, atol=1e-5, rtol=1e-5), "mismatch vs reference"

    print("KERNEL_OK")
</pallas_src>

<mosaic_0001>
module attributes {stable_mosaic.version = 11 : i64} {
  func.func @_se_kernel(%arg0: i32, %arg1: memref<1x16x256xf32, #tpu.memory_space<vmem>>, %arg2: memref<16x8xf32, #tpu.memory_space<vmem>>, %arg3: memref<1x8xf32, #tpu.memory_space<vmem>>, %arg4: memref<8x16xf32, #tpu.memory_space<vmem>>, %arg5: memref<1x16xf32, #tpu.memory_space<vmem>>, %arg6: memref<1x16x256xf32, #tpu.memory_space<vmem>>) attributes {dimension_semantics = [#tpu.dimension_semantics<parallel>], iteration_bounds = array<i64: 2>, scalar_prefetch = 0 : i64, scratch_operands = 0 : i64, tpu.core_type = #tpu.core_type<tc>, window_params = [{transform_indices = @transform_0, window_bounds = array<i64: 1, 16, 256>}, {pipeline_mode = #tpu.pipeline_mode<synchronous>, transform_indices = @transform_1, window_bounds = array<i64: 16, 8>}, {pipeline_mode = #tpu.pipeline_mode<synchronous>, transform_indices = @transform_2, window_bounds = array<i64: 1, 8>}, {pipeline_mode = #tpu.pipeline_mode<synchronous>, transform_indices = @transform_3, window_bounds = array<i64: 8, 16>}, {pipeline_mode = #tpu.pipeline_mode<synchronous>, transform_indices = @transform_4, window_bounds = array<i64: 1, 16>}, {transform_indices = @transform_5, window_bounds = array<i64: 1, 16, 256>}]} {
    %c0 = arith.constant 0 : index
    %c0_0 = arith.constant 0 : index
    %c0_1 = arith.constant 0 : index
    %0 = vector.load %arg1[%c0, %c0_0, %c0_1] : memref<1x16x256xf32, #tpu.memory_space<vmem>>, vector<1x16x256xf32>
    %cst = arith.constant dense<0.000000e+00> : vector<1x16xf32>
    %1 = vector.multi_reduction <add>, %0, %cst [2] : vector<1x16x256xf32> to vector<1x16xf32>
    %cst_2 = arith.constant 3.906250e-03 : f32
    %2 = vector.broadcast %cst_2 : f32 to vector<1x16xf32>
    %3 = arith.mulf %1, %2 : vector<1x16xf32>
    %c0_3 = arith.constant 0 : index
    %c0_4 = arith.constant 0 : index
    %4 = vector.load %arg2[%c0_3, %c0_4] : memref<16x8xf32, #tpu.memory_space<vmem>>, vector<16x8xf32>
    %cst_5 = arith.constant dense<0.000000e+00> : vector<1x8xf32>
    %5 = tpu.matmul %3, %4, %cst_5 {dimension_numbers = #tpu.dot_dimension_numbers<[1], [0], [0], [1], [0, 0, 1, 1], [], []>} : vector<1x16xf32>, vector<16x8xf32>, vector<1x8xf32> -> vector<1x8xf32>
    %c0_6 = arith.constant 0 : index
    %c0_7 = arith.constant 0 : index
    %6 = vector.load %arg3[%c0_6, %c0_7] : memref<1x8xf32, #tpu.memory_space<vmem>>, vector<1x8xf32>
    %7 = arith.addf %5, %6 : vector<1x8xf32>
    %cst_8 = arith.constant 0.000000e+00 : f32
    %8 = vector.broadcast %cst_8 : f32 to vector<1x8xf32>
    %9 = arith.maximumf %7, %8 : vector<1x8xf32>
    %c0_9 = arith.constant 0 : index
    %c0_10 = arith.constant 0 : index
    %10 = vector.load %arg4[%c0_9, %c0_10] : memref<8x16xf32, #tpu.memory_space<vmem>>, vector<8x16xf32>
    %cst_11 = arith.constant dense<0.000000e+00> : vector<1x16xf32>
    %11 = tpu.matmul %9, %10, %cst_11 {dimension_numbers = #tpu.dot_dimension_numbers<[1], [0], [0], [1], [0, 0, 1, 1], [], []>} : vector<1x8xf32>, vector<8x16xf32>, vector<1x16xf32> -> vector<1x16xf32>
    %c0_12 = arith.constant 0 : index
    %c0_13 = arith.constant 0 : index
    %12 = vector.load %arg5[%c0_12, %c0_13] : memref<1x16xf32, #tpu.memory_space<vmem>>, vector<1x16xf32>
    %13 = arith.addf %11, %12 : vector<1x16xf32>
    %cst_14 = arith.constant 3.000000e+00 : f32
    %14 = vector.broadcast %cst_14 : f32 to vector<1x16xf32>
    %15 = arith.addf %13, %14 : vector<1x16xf32>
    %cst_15 = arith.constant 6.000000e+00 : f32
    %16 = vector.broadcast %cst_15 : f32 to vector<1x16xf32>
    %17 = arith.divf %15, %16 : vector<1x16xf32>
    %cst_16 = arith.constant 0.000000e+00 : f32
    %cst_17 = arith.constant 1.000000e+00 : f32
    %18 = vector.broadcast %cst_16 : f32 to vector<1x16xf32>
    %19 = arith.maximumf %18, %17 : vector<1x16xf32>
    %20 = vector.broadcast %cst_17 : f32 to vector<1x16xf32>
    %21 = arith.minimumf %20, %19 : vector<1x16xf32>
    %22 = vector.shape_cast %21 : vector<1x16xf32> to vector<1x16x1xf32>
    %23 = vector.broadcast %22 : vector<1x16x1xf32> to vector<1x16x256xf32>
    %24 = arith.mulf %0, %23 : vector<1x16x256xf32>
    %c0_18 = arith.constant 0 : index
    %c0_19 = arith.constant 0 : index
    %c0_20 = arith.constant 0 : index
    %25 = vector.load %arg6[%c0_18, %c0_19, %c0_20] : memref<1x16x256xf32, #tpu.memory_space<vmem>>, vector<1x16x256xf32>
    tpu.vector_store %arg6[%c0_18, %c0_19, %c0_20], %24 {strides = array<i32>} : memref<1x16x256xf32, #tpu.memory_space<vmem>>, vector<1x16x256xf32>,
    return
  }
  func.func @transform_0(%arg0: i32) -> (i32, i32, i32) {
    %c0_i32 = arith.constant 0 : i32
    %c0_i32_0 = arith.constant 0 : i32
    %c0_i32_1 = arith.constant 0 : i32
    return %arg0, %c0_i32, %c0_i32_0 : i32, i32, i32
  }
  func.func @transform_1(%arg0: i32) -> (i32, i32) {
    %c0_i32 = arith.constant 0 : i32
    %c0_i32_0 = arith.constant 0 : i32
    %c0_i32_1 = arith.constant 0 : i32
    return %c0_i32, %c0_i32_0 : i32, i32
  }
  func.func @transform_2(%arg0: i32) -> (i32, i32) {
    %c0_i32 = arith.constant 0 : i32
    %c0_i32_0 = arith.constant 0 : i32
    %c0_i32_1 = arith.constant 0 : i32
    return %c0_i32, %c0_i32_0 : i32, i32
  }
  func.func @transform_3(%arg0: i32) -> (i32, i32) {
    %c0_i32 = arith.constant 0 : i32
    %c0_i32_0 = arith.constant 0 : i32
    %c0_i32_1 = arith.constant 0 : i32
    return %c0_i32, %c0_i32_0 : i32, i32
  }
  func.func @transform_4(%arg0: i32) -> (i32, i32) {
    %c0_i32 = arith.constant 0 : i32
    %c0_i32_0 = arith.constant 0 : i32
    %c0_i32_1 = arith.constant 0 : i32
    return %c0_i32, %c0_i32_0 : i32, i32
  }
  func.func @transform_5(%arg0: i32) -> (i32, i32, i32) {
    %c0_i32 = arith.constant 0 : i32
    %c0_i32_0 = arith.constant 0 : i32
    %c0_i32_1 = arith.constant 0 : i32
    return %arg0, %c0_i32, %c0_i32_0 : i32, i32, i32
  }
}

</mosaic_0001>

<bundles_post_ra>
// kernel: tpu_custom_call.1
= control target key start
LH: loop header
LB: loop body
LE: loop exit
PB: predicated region body
PF: predicated region fallthrough
CT: control target
= control target key end

     0   :  { %10 = vsyncpa [#allocation3], 0  ;;  %s934_s0 = inlined_call_operand.hbm [shape: f32[2,16,256], index: 0, kind: input, shape index: {}]   ;;  %s935_s1 = inlined_call_operand.vmem [shape: f32[16,8], index: 1, kind: input, shape index: {}]   ;;  %s936_s2 = inlined_call_operand.vmem [shape: f32[1,8], index: 2, kind: input, shape index: {}]   ;;  %s937_s3 = inlined_call_operand.vmem [shape: f32[8,16], index: 3, kind: input, shape index: {}]   ;;  %s938_s4 = inlined_call_operand.vmem [shape: f32[1,16], index: 4, kind: input, shape index: {}]   ;;  %s939_s5 = inlined_call_operand.hbm [shape: f32[2,16,256], index: 5, kind: output, shape index: {}]  }
   0x1   :  { %12 = vsyncpa [#allocation3 + $0x1], 0 }
   0x2   :  { %13 = vsyncpa [#allocation4], 0 }
   0x3   :  { %15 = vsyncpa [#allocation4 + $0x1], 0  ;;  %s753_s18 = smov 0   ;;  %s755_s19 = smov 0  }
   0x4   :  { %s757_s20 = smov 0   ;;  %s759_s21 = smov 0  }
   0x5 LB: > { %s774_s22 = sadd.s32 4294967295, %s713_s21   ;;  %s534_s23 = sadd.s32 4294967294, %s713_s21   ;;  %s713_s21 = sphi %s759_s21, %s954_s21   ;;  %s709_s20 = sphi %s757_s20, %s953_s20   ;;  %s705_s19 = sphi %s755_s19, %s952_s19   ;;  %s701_s18 = sphi %s753_s18, %s951_s18  }
   0x6   : > { %s778_s24 = sadd.s32 1, %s713_s21   ;;  %s28_s25 = sadd.s32 1, %s709_s20 }
   0x7   : > { %s25_s26 = ssub.s32 %s713_s21, %s778_s24  ;;  %p35_p0 = scmp.ne.s32.totalorder %s709_s20, %s705_s19 }
   0x8   : > { %p26_p1 = scmp.eq.s32.totalorder %s25_s26, 0  ;;  %p36_p2 = scmp.eq.s32.totalorder %s713_s21, 0 }
   0x9   : > { %p41_p3 = scmp.ne.s32.totalorder %s705_s19, %s701_s18  ;;  %p42_p4 = scmp.eq.s32.totalorder %s774_s22, 0 }
   0xa   : > { %s790_s27 = scalar_select %p26_p1, %s709_s20, %s28_s25  }
   0xb   : > { %p792_p5 = por %p36_p2, %p35_p0  ;;  %p796_p6 = por %p42_p4, %p41_p3 }
   0xc   : > { %p149_p7 = scmp.eq.s32.totalorder %s774_s22, 1  ;;  %p155_p8 = scmp.eq.s32.totalorder %s534_s23, 1 }
   0xd   : > { %s943_s29 = scalar_select %p796_p6, 1, 0 }
   0xe   : > { %p581_p10 = scmp.lt.s32.totalorder %s713_s21, 2  ;;  %p803_p11 = por %p149_p7, %p35_p0 }
   0xf   : > { %p807_p12 = por %p155_p8, %p41_p3  ;;  %s187_s7 = sand.u32 1, %s709_s20  }
  0x10   : > { %s944_s30 = scalar_select %p803_p11, 1, 0 }
  0x11   : > { %s945_s6 = scalar_select %p807_p12, 1, 0 }
  0x12   : > { %s550_s8 = sshll.u32 %s713_s21, 9  ;;  %s537_s9 = sshll.u32 %s187_s7, 5 }
  0x13   : > { %s816_s12 = scalar_lea.hbm %s934_s0, %s550_s8  ;;  %s191_s13 = scalar_lea.vmem [#allocation2], %s537_s9 }
  0x14   : > { %s198_s14 = sshll.u32 %s191_s13, 4  ;;  %p820_p13 = pnand %p581_p10, %p792_p5  ;;  %s824_s14 = int_to_ptr.vmem [resolvable:$true] %s198_s14 }
  0x15   : > { %s826_s16 = scalar_lea.sflag [#allocation3], %s187_s7  ;;  %s621_s17 = scalar_lea.hbm %s816_s12, 512 }
  0x16   : > { %p622_p0 = scmp.ne.s32.totalorder %s816_s12, %s621_s17  ;;  %p623_p1 = pneg %p820_p13 }
  0x17   : > { %s626_s26 = scalar_lea.hbm %s934_s0, 1024  ;;  %p627_p4 = scmp.lt.s32.totalorder %s816_s12, %s934_s0 }
  0x18   : > { %p624_p2 = pnand %p623_p1, %p622_p0  ;;  %p628_p5 = scmp.lt.s32.totalorder %s626_s26, %s621_s17 }
  0x1a   : > { %p625_p3 = pneg %p624_p2  ;;  %p629_p7 = por %p628_p5, %p627_p4 }
  0x1c   : > { %p630_p8 = pnand %p629_p7, %p625_p3 }
  0x1e   : > { %633 = shalt.err (!%p630_p8)
}
  0x1f   : > { %s634_s7 = scalar_lea.vmem %s824_s14, 512  ;;  %s715_s9 = smov [#allocation2]  }
  0x20   : > { %p635_p10 = scmp.ne.s32.totalorder %s824_s14, %s634_s7  ;;  %s639_s10 = sshll.u32 %s715_s9, 4  ;;  %s640_s10 = int_to_ptr.vmem [resolvable:$false] %s639_s10 }
  0x21   : > { %s641_s11 = scalar_lea.vmem %s640_s10, 1024  ;;  %p642_p2 = scmp.lt.s32.totalorder %s824_s14, %s640_s10 }
  0x22   : > { %p637_p9 = pnand %p635_p10, %p623_p1  ;;  %p643_p12 = scmp.lt.s32.totalorder %s641_s11, %s634_s7 }
  0x24   : > { %p638_p0 = pneg %p637_p9  ;;  %p644_p11 = por %p643_p12, %p642_p2 }
  0x26   : > { %p645_p6 = pnand %p644_p11, %p638_p0 }
  0x28   : > { %648 = shalt.err (!%p645_p6)
}
  0x29   : > { %s716_s13 = smov 256   ;;  %s717_s17 = smov 16  }
  0x2a   : > { %576 = dma.hbm_to_vmem [thread:$0]  (!%p820_p13), %s816_s12, 512, %s824_s14, %s826_s16, %s716_s13, %s716_s13, %s717_s17  }
  0x2b   : > { %p540_p9 = scmp.ge.s32.totalorder %s713_s21, 1  ;;  %p206_p1 = scmp.lt.s32.totalorder %s713_s21, 3 }
  0x2d   : > { %p207_p3 = pnand %p540_p9, %p206_p1 }
  0x2e   : > { %s850_s23 = sand.u32 (!%p207_p3), 1, %s705_s19   ;;  %p947_p6 = scmp.ne.s32.totalorder (!%p207_p3), %s943_s29, 0 }
  0x2f   : > { %210 = sbr.rel (%p207_p3) target bundleno = 740 (0x2e4), region = 40  ;;  %s541_s25 = sshll.u32 (!%p207_p3), %s850_s23, 5 }
  0x30   : > { %s213_s26 = scalar_lea.sflag (!%p207_p3), [#allocation3], %s850_s23  ;;  %s216_s28 = scalar_lea.vmem (!%p207_p3), [#allocation2], %s541_s25 }
  0x34   : > { %692 = dma.done.wait (%p947_p6), %s213_s26, 512  }
  0x35   : > { %694 = vsyncadd (%p947_p6), %s213_s26, 4294966784  ;;  %v243_v0 = vld [vmem:[%s216_s28] sm:$0xff]  ;;  %v244_v1 = vld [vmem:[%s216_s28 + $0x8] sm:$0xff]  ;;  %v718_v6 = vmov 0.0   ;;  %vm719_vm0 = vmmov 0   ;;  %v260_v9 = vlaneseq  ;;  %vm271_vm1 = vcmask 130112  }
  0x36   : > { %v860_v2 = vld [vmem:[%s216_s28 + $0x10] sm:$0xff]  ;;  %v247_v3 = vadd.f32 %v244_v1, %v243_v0  ;;  %v862_v4 = vld [vmem:[%s216_s28 + $0x18] sm:$0xff]  ;;  %557 = vmatprep.subr.mxu0 %v718_v6  ;;  %v256_v7 = vld [vmem:[%s935_s1 + $0x8] sm:$0xff]  ;;  %564 = vmatprep.subr.mxu1 %v718_v6  ;;  %vm273_vm2 = vcmask 130048   ;;  %vm349_vm3 = vcmask 64512   ;;  %s242_s13 = scalar_lea.vmem [#allocation5], %s541_s25 }
  0x37   : > { %v250_v5 = vadd.f32 %v862_v4, %v860_v2  ;;  %558 = vmatpush3.msra.mxu0 %v256_v7  ;;  %v255_v8 = vld [vmem:[%s935_s1] sm:$0xff]  ;;  %561 = vmatprep.mubr.msk.f32.mxu0 %vm719_vm0, %v718_v6  ;;  %v261_v10 = vand.u32 127, %v260_v9  ;;  %v263_v11 = vshrl.u32 %v260_v9, 7  ;;  %s461_s17 = sshll.u32 %s242_s13, 4  ;;  %s551_s26 = sshll.u32 %s774_s22, 9  ;;  %s884_s17 = int_to_ptr.vmem [resolvable:$true] %s461_s17 }
  0x38   : > { %248 = vadd.xlane.f32.xlu0 %v247_v3  ;;  %559 = vmatprep.subr.mxu0 %v718_v6  ;;  %v347_v22 = vld [vmem:[%s937_s3] sm:$0xff]  ;;  %s889_s14 = scalar_lea.hbm %s939_s5, %s551_s26  ;;  %s448_s22 = scalar_lea.sflag [#allocation4], %s850_s23 }
  0x39   : > { %560 = vmatpush3.msra.mxu0 %v255_v8  ;;  %566 = vmatprep.mubr.msk.f32.mxu1 %vm719_vm0, %v718_v6  ;;  %v266_v12 = vadd.s32 4294967288, %v261_v10  ;;  %v264_v14 = vsub.s32 %v261_v10, %v263_v11  ;;  %v257_v23 = vld [vmem:[%s936_s2] sm:$0x1]  ;;  %v430_v35 = vsub.s32 0, %v263_v11  ;;  %s649_s25 = scalar_lea.vmem %s884_s17, 512  ;;  %p948_p12 = scmp.ne.s32.totalorder %s944_s30, 0 }
  0x3a   : > { %565 = vmatpush3.msra.mxu1 %v347_v22  ;;  %v348_v28 = vld [vmem:[%s938_s4] sm:$0x1]  ;;  %p650_p11 = scmp.ne.s32.totalorder %s884_s17, %s649_s25  ;;  %s720_s29 = smov [#allocation5]  }
  0x3b   : > { %v269_v16 = vsub.s32 %v266_v12, %v263_v11  ;;  %s653_s15 = sshll.u32 %s720_s29, 4  ;;  %s654_s15 = int_to_ptr.vmem [resolvable:$false] %s653_s15 }
  0x3c   : > { %251 = vadd.xlane.f32.xlu0 %v250_v5  ;;  %p651_p13 = pnand %p650_p11, %p948_p12  ;;  %s655_s16 = scalar_lea.vmem %s654_s15, 1024 }
  0x3d   : > { %p656_p5 = scmp.lt.s32.totalorder %s884_s17, %s654_s15  ;;  %p657_p7 = scmp.lt.s32.totalorder %s655_s16, %s649_s25 }
  0x3e   : > { %p652_p4 = pneg %p651_p13 }
  0x3f   : > { %p658_p8 = por %p657_p7, %p656_p5 }
  0x41   : > { %p659_p10 = pnand %p658_p8, %p652_p4 }
  0xc1   : > { %v249_v13 = vpop.xlane.xlu0 %248 }
  0xc2   : > { %v253_v15 = vmul.f32 0.00390625, %v249_v13 }
  0xc4   : > { %v265_v19 = vrot.slane %v253_v15, %v264_v14 }
  0xc5   : > { %v252_v17 = vpop.xlane.xlu0 %251 }
  0xc6   : > { %v254_v18 = vmul.f32 0.00390625, %v252_v17 }
  0xc8   : > { %v270_v20 = vrot.slane %v254_v18, %v269_v16 }
  0xca   : > { %v272_v21 = vsel %vm271_vm1, %v270_v20, %v265_v19 }
  0xcb   : > { %562 = vmatmul.mubr.msk.f32.vlgmr.msra.gmra.mxu0 %vm273_vm2, %v272_v21 }
 0x18b   : > { %v342_v24 = vpop.f32.mrf.mxu0 }
 0x18c   : > { %v343_v25 = vadd.f32 %v342_v24, %v257_v23 }
 0x18d   : > { %v563_v26 = vpop.f32.mrf.mxu0 }
 0x18e   : > { %v346_v27 = vmax.f32 %v343_v25, 0.0 }
 0x190   : > { %567 = vmatmul.mubr.msk.f32.vlgmr.msra.gmra.mxu1 %vm349_vm3, %v346_v27 }
 0x250   : > { %v419_v29 = vpop.f32.mrf.mxu1 }
 0x251   : > { %v420_v30 = vadd.f32 %v419_v29, %v348_v28 }
 0x252   : > { %v568_v31 = vpop.f32.mrf.mxu1 }
 0x253   : > { %v423_v32 = vadd.f32 3.0, %v420_v30 }
 0x255   : > { %v425_v33 = vmul.f32 0.16666667, %v423_v32 }
 0x257   : > { %v426_v34 = vmax.f32 %v425_v33, 0.0 }
 0x259   : > { %v427_v36 = vmin.f32 %v426_v34, 1.0 }
 0x25b   : > { %v431_v37 = vrot.slane %v427_v36, %v430_v35 }
 0x25d   : > { %433 = vbcast.lane.b32.xlu1 %v431_v37, 256 }
 0x261   : > { %437 = vbcast.lane.b32.xlu1 %v431_v37, 264 }
 0x2cf   : > { %v434_v38 = vpop.permute.xlu1 %433 }
 0x2d0   : > { %v439_v39 = vmul.f32 %v434_v38, %v243_v0  ;;  %v440_v40 = vmul.f32 %v434_v38, %v244_v1 }
 0x2d2   : > { %443 = vst [vmem:[%s242_s13] sm:$0xff] %v439_v39  ;;  %444 = vst [vmem:[%s242_s13 + $0x8] sm:$0xff] %v440_v40 }
 0x2d3   : > { %v438_v41 = vpop.permute.xlu1 %437 }
 0x2d4   : > { %v441_v42 = vmul.f32 %v438_v41, %v860_v2  ;;  %v442_v43 = vmul.f32 %v438_v41, %v862_v4 }
 0x2d6   : > { %445 = vst [vmem:[%s242_s13 + $0x10] sm:$0xff] %v441_v42  ;;  %446 = vst [vmem:[%s242_s13 + $0x18] sm:$0xff] %v442_v43 }
 0x2d7   : > { %662 = shalt.err (!%p659_p10)
}
 0x2d8   : > { %s663_s8 = scalar_lea.hbm %s889_s14, 512  ;;  %s667_s10 = scalar_lea.hbm %s939_s5, 1024 }
 0x2d9   : > { %p664_p0 = scmp.ne.s32.totalorder %s889_s14, %s663_s8  ;;  %p668_p1 = scmp.lt.s32.totalorder %s889_s14, %s939_s5 }
 0x2da   : > { %p669_p3 = scmp.lt.s32.totalorder %s667_s10, %s663_s8 }
 0x2db   : > { %p665_p2 = pnand %p664_p0, %p948_p12 }
 0x2dc   : > { %p670_p6 = por %p669_p3, %p668_p1 }
 0x2dd   : > { %p666_p9 = pneg %p665_p2 }
 0x2df   : > { %p671_p11 = pnand %p670_p6, %p666_p9 }
 0x2e1   : > { %674 = shalt.err (!%p671_p11)
}
 0x2e2   : > { %s721_s26 = smov 256   ;;  %s722_s28 = smov 16  }
 0x2e3   : > { %571 = dma.vmem_to_hbm [thread:$0]  (%p948_p12), %s884_s17, 512, %s889_s14, %s448_s22, %s721_s26, %s721_s26, %s722_s28  }
 0x2e4 PF: > { %s476_s12 = sand.u32 1, %s701_s18   ;;  %p949_p13 = scmp.ne.s32.totalorder %s945_s6, 0 }
 0x2e5   : > { %p950_p4 = scmp.ge.s32.totalorder %s713_s21, 2  ;;  %s477_s25 = scalar_lea.sflag [#allocation4], %s476_s12 }
 0x2e7   : > { %p578_p5 = pnand %p950_p4, %p949_p13 }
 0x2e9   : > { %p579_p7 = pneg %p578_p5 }
 0x2eb   : > { %696 = dma.done.wait (%p579_p7), %s477_s25, 512  }
 0x2ec   : > { %698 = vsyncadd (%p579_p7), %s477_s25, 4294966784  ;;  %p18_p8 = scmp.ge.s32.totalorder %s778_s24, 4   ;;  %s951_s18 = smov %s705_s19 }
 0x2ed   : > { %s952_s19 = smov %s709_s20  ;;  %s953_s20 = smov %s790_s27 }
 0x2ee   : > { %s954_s21 = smov %s778_s24  ;;  %20 = sbr.rel (!%p18_p8) target bundleno = 5 (0x5), region = 85 }
 0x2f3   :  { %482 = vsyncpa [#allocation3], 1 }
 0x2f4   :  { %484 = vsyncpa [#allocation3 + $0x1], 1 }
 0x2f5   :  { %485 = vsyncpa [#allocation4], 1 }
 0x2f6   :  { %487 = vsyncpa [#allocation4 + $0x1], 1 }

</bundles_post_ra>
